<compile_context>
chip_gen: v7x
topology: tpu7x:2x2x1
jax: 0.10.0
libtpu: 0.0.40
codegen_flags: <defaults>
</compile_context>

<pallas_src>
from functools import partial

import jax
import jax.numpy as jnp
from jax.experimental import pallas as pl
from jax.experimental.pallas import tpu as pltpu


def self_attention_kernel(xq_ref, xk_ref, wg_ref, bg_ref, wfh_ref, bfh_ref,
                          wv_ref, bv_ref, gamma_ref,
                          o_ref, g_scr, m_scr, acc_scr,
                          *, ck, ck_pad, exp_bf16):
    ki = pl.program_id(2)

    # ---- once per (batch, q-tile): project g for the j-block, reset state ----
    @pl.when(ki == 0)
    def _():
        xq16 = xq_ref[0].astype(jnp.bfloat16)                        # (C, Tq)
        g = jax.lax.dot_general(
            wg_ref[...], xq16, (((1,), (0,)), ((), ())),
            preferred_element_type=jnp.float32) + bg_ref[...]        # (CkP, Tq)
        g_scr[...] = g
        m_scr[...] = jnp.full(m_scr.shape, -jnp.inf, dtype=m_scr.dtype)
        acc_scr[...] = jnp.zeros(acc_scr.shape, dtype=acc_scr.dtype)

    # ---- per kv-tile: fused f/h projection (sentinel ones row lives in h) ----
    xk16 = xk_ref[0].astype(jnp.bfloat16)                            # (C, Tk)
    fh = jax.lax.dot_general(
        wfh_ref[...], xk16, (((1,), (0,)), ((), ())),
        preferred_element_type=jnp.float32) + bfh_ref[...]           # (2*CkP, Tk)
    f16 = fh[:ck_pad].astype(jnp.bfloat16)                           # (CkP, Tk)
    h16 = fh[ck_pad:].astype(jnp.bfloat16)                           # (CkP, Tk), row ck == 1

    # Scores s[i, j] = sum_c f[c, i] * g[c, j] -> (Tk, Tq).  The torch softmax
    # (dim=1, i.e. over i) reduces over the sublane axis here and over the kv
    # grid axis online; padded channel rows are zero so K = CkP is exact.
    g16 = g_scr[...].astype(jnp.bfloat16)
    s = jax.lax.dot_general(
        f16, g16, (((0,), (0,)), ((), ())),
        preferred_element_type=jnp.float32)                          # (Tk, Tq)

    # Online softmax with deferred normalization: no divide here, and no
    # explicit row-sum — the sentinel ones row of h carries l on the MXU.
    m_prev = m_scr[...]                                              # (1, Tq)
    m_new = jnp.maximum(m_prev, jnp.max(s, axis=0, keepdims=True))   # (1, Tq)
    alpha = jnp.exp(m_prev - m_new)                                  # (1, Tq)
    if exp_bf16:
        p16 = jnp.exp((s - m_new).astype(jnp.bfloat16))              # bf16 EUP (v6e/v7x)
    else:
        p16 = jnp.exp(s - m_new).astype(jnp.bfloat16)                # f32 EUP (v5e etc.)
    acc_scr[...] = alpha * acc_scr[...] + jax.lax.dot_general(
        h16, p16, (((1,), (0,)), ((), ())),
        preferred_element_type=jnp.float32)                          # (CkP, Tq)
    m_scr[...] = m_new

    # ---- finalize at the last kv tile ----
    @pl.when(ki == pl.num_programs(2) - 1)
    def _():
        # acc[ck] is exactly l = sum_i exp(s[i, j] - m[j]); exact reciprocal on
        # only (1, Tq) elements (deferred-normalization accuracy win).
        inv = pl.reciprocal(acc_scr[ck:ck + 1, :], approx=False)     # (1, Tq)
        h2_16 = (acc_scr[...] * inv).astype(jnp.bfloat16)            # (CkP, Tq)
        o = jax.lax.dot_general(
            wv_ref[...], h2_16, (((1,), (0,)), ((), ())),
            preferred_element_type=jnp.float32) + bv_ref[...]        # (C, Tq)
        # gamma residual (gamma is an SMEM scalar); residual uses exact f32 x.
        o_ref[0] = gamma_ref[0] * o + xq_ref[0]


def _pick_tile(L, max_tile):
    """Largest multiple of 128 that divides L and is <= max_tile; else full L."""
    best = None
    t = 128
    while t <= min(L, max_tile):
        if L % t == 0:
            best = t
        t += 128
    # TODO(synk): for L not a multiple of 128, pad L in the wrapper and mask the
    # padded key positions to -inf instead of falling back to one full-L tile.
    return best if best is not None else L


def _bf16_exp_ok():
    """bf16 transcendentals only on v6e/v7x-class EUPs; stay f32 elsewhere."""
    try:
        kind = jax.devices()[0].device_kind.lower()
    except Exception:
        return False
    return any(tag in kind for tag in ("v6", "v7", "7x"))


def self_attention_pallas(x_nchw, params, *, tile_q=512, tile_k=512):
    B, C, W, H = x_nchw.shape
    L = W * H
    Ck = params["wf"].shape[0]
    # Pad Ck up with at least one spare sublane row (the all-ones sentinel).
    CkP = ((Ck + 8) // 8) * 8

    tq = _pick_tile(L, tile_q)
    tk = _pick_tile(L, tile_k)
    nq, nk = L // tq, L // tk

    # NCHW -> (B, C, L): a pure reshape, no transpose.
    x_bcl = x_nchw.reshape(B, C, L).astype(jnp.float32)

    wg = (jnp.zeros((CkP, C), jnp.float32).at[:Ck].set(params["wg"])
          .astype(jnp.bfloat16))                                       # (CkP, C)
    bg = jnp.zeros((CkP, 1), jnp.float32).at[:Ck, 0].set(params["bg"])
    wfh = (jnp.zeros((2 * CkP, C), jnp.float32)
           .at[:Ck].set(params["wf"])
           .at[CkP:CkP + Ck].set(params["wh"])
           .astype(jnp.bfloat16))                                      # (2*CkP, C)
    bfh = (jnp.zeros((2 * CkP, 1), jnp.float32)
           .at[:Ck, 0].set(params["bf"])
           .at[CkP:CkP + Ck, 0].set(params["bh"])
           .at[CkP + Ck, 0].set(1.0))            # sentinel ones row of h (row-sum on MXU)
    wv = (jnp.zeros((C, CkP), jnp.float32).at[:, :Ck].set(params["wv"])
          .astype(jnp.bfloat16))                                       # (C, CkP), cols >= Ck are zero
    bv = params["bv"].reshape(C, 1).astype(jnp.float32)
    gamma = params["gamma"].reshape((1,)).astype(jnp.float32)

    kernel = partial(self_attention_kernel, ck=Ck, ck_pad=CkP,
                     exp_bf16=_bf16_exp_ok())

    out = pl.pallas_call(
        kernel,
        out_shape=jax.ShapeDtypeStruct((B, C, L), jnp.float32),
        grid_spec=pltpu.PrefetchScalarGridSpec(
            num_scalar_prefetch=0,
            grid=(B, nq, nk),
            in_specs=[
                pl.BlockSpec((1, C, tq), lambda b, q, k: (b, 0, q)),   # x (q side / residual)
                pl.BlockSpec((1, C, tk), lambda b, q, k: (b, 0, k)),   # x (kv side)
                pl.BlockSpec((CkP, C), lambda b, q, k: (0, 0)),        # Wg
                pl.BlockSpec((CkP, 1), lambda b, q, k: (0, 0)),        # bg
                pl.BlockSpec((2 * CkP, C), lambda b, q, k: (0, 0)),    # fused Wf/Wh
                pl.BlockSpec((2 * CkP, 1), lambda b, q, k: (0, 0)),    # fused bf/bh (+sentinel)
                pl.BlockSpec((C, CkP), lambda b, q, k: (0, 0)),        # Wv (padded cols zero)
                pl.BlockSpec((C, 1), lambda b, q, k: (0, 0)),          # bv
                pl.BlockSpec(memory_space=pltpu.MemorySpace.SMEM),     # gamma scalar
            ],
            out_specs=pl.BlockSpec((1, C, tq), lambda b, q, k: (b, 0, q)),
            scratch_shapes=[
                pltpu.VMEM((CkP, tq), jnp.float32),   # g projection (per q-tile)
                pltpu.VMEM((1, tq), jnp.float32),     # online max m
                pltpu.VMEM((CkP, tq), jnp.float32),   # acc (sentinel row carries l)
            ],
        ),
        compiler_params=pltpu.CompilerParams(
            dimension_semantics=("parallel", "parallel", "arbitrary"),
            vmem_limit_bytes=48 * 1024 * 1024),
    )(x_bcl, x_bcl, wg, bg, wfh, bfh, wv, bv, gamma)

    # (B, C, L) -> NCHW: again a pure reshape.
    return out.reshape(B, C, W, H)


def self_attention_ref(x, params):
    """Pure-JAX f32 reference mirroring the PyTorch forward (NCHW)."""
    B, C, W, H = x.shape
    L = W * H
    xf = x.reshape(B, C, L)
    f = jnp.einsum("oc,bcl->bol", params["wf"], xf) + params["bf"][None, :, None]
    g = jnp.einsum("oc,bcl->bol", params["wg"], xf) + params["bg"][None, :, None]
    h = jnp.einsum("oc,bcl->bol", params["wh"], xf) + params["bh"][None, :, None]
    s = jnp.einsum("bci,bcj->bij", f, g)                  # bmm(f.permute, g)
    beta = jax.nn.softmax(s, axis=1)                      # torch dim=1
    h2 = jnp.einsum("bci,bij->bcj", h, beta)              # bmm(h, beta)
    o = jnp.einsum("oc,bcl->bol", params["wv"], h2) + params["bv"][None, :, None]
    return params["gamma"][0] * o.reshape(B, C, W, H) + x


if __name__ == "__main__":
    B, C, W, H = 2, 32, 16, 16          # L = 256, Ck = 4
    k = 8
    Ck = C // k

    key = jax.random.PRNGKey(0)
    ks = jax.random.split(key, 10)
    params = {
        "wf": 0.1 * jax.random.normal(ks[0], (Ck, C), jnp.float32),
        "bf": 0.1 * jax.random.normal(ks[1], (Ck,), jnp.float32),
        "wg": 0.1 * jax.random.normal(ks[2], (Ck, C), jnp.float32),
        "bg": 0.1 * jax.random.normal(ks[3], (Ck,), jnp.float32),
        "wh": 0.1 * jax.random.normal(ks[4], (Ck, C), jnp.float32),
        "bh": 0.1 * jax.random.normal(ks[5], (Ck,), jnp.float32),
        "wv": 0.1 * jax.random.normal(ks[6], (C, Ck), jnp.float32),
        "bv": 0.1 * jax.random.normal(ks[7], (C,), jnp.float32),
        # torch init is gamma = 0 (identity); use a nonzero deterministic value
        # so the attention path actually contributes to the result.
        "gamma": jnp.array([0.5], jnp.float32),
    }
    x = jax.random.normal(ks[8], (B, C, W, H), jnp.float32)

    # tile 128 so the test exercises the multi-tile online-softmax path
    # (grid = (2, 2, 2)); production default keeps 512-wide tiles.
    y = jax.block_until_ready(self_attention_pallas(x, params, tile_q=128, tile_k=128))
    y_ref = jax.block_until_ready(self_attention_ref(x, params))

    assert y.shape == (B, C, W, H)
    # bf16 MXU operands (+ bf16 exp on v6e/v7x); normalization is exact f32.
    assert jnp.allclose(y, y_ref, atol=5e-2, rtol=5e-2), "mismatch vs JAX reference"
    print("KERNEL_OK")
</pallas_src>

<mosaic_0001>
module attributes {stable_mosaic.version = 11 : i64} {
  func.func @self_attention_kernel(%arg0: i32, %arg1: i32, %arg2: i32, %arg3: memref<1x32x128xf32, #tpu.memory_space<vmem>>, %arg4: memref<1x32x128xf32, #tpu.memory_space<vmem>>, %arg5: memref<8x32xbf16, #tpu.memory_space<vmem>>, %arg6: memref<8x1xf32, #tpu.memory_space<vmem>>, %arg7: memref<16x32xbf16, #tpu.memory_space<vmem>>, %arg8: memref<16x1xf32, #tpu.memory_space<vmem>>, %arg9: memref<32x8xbf16, #tpu.memory_space<vmem>>, %arg10: memref<32x1xf32, #tpu.memory_space<vmem>>, %arg11: memref<1xf32, #tpu.memory_space<smem>>, %arg12: memref<1x32x128xf32, #tpu.memory_space<vmem>>, %arg13: memref<8x128xf32, #tpu.memory_space<vmem>>, %arg14: memref<1x128xf32, #tpu.memory_space<vmem>>, %arg15: memref<8x128xf32, #tpu.memory_space<vmem>>) attributes {dimension_semantics = [#tpu.dimension_semantics<parallel>, #tpu.dimension_semantics<parallel>, #tpu.dimension_semantics<arbitrary>], iteration_bounds = array<i64: 2, 2, 2>, scalar_prefetch = 0 : i64, scratch_operands = 3 : i64, tpu.core_type = #tpu.core_type<tc>, window_params = [{transform_indices = @transform_0, window_bounds = array<i64: 1, 32, 128>}, {transform_indices = @transform_1, window_bounds = array<i64: 1, 32, 128>}, {pipeline_mode = #tpu.pipeline_mode<synchronous>, transform_indices = @transform_2, window_bounds = array<i64: 8, 32>}, {pipeline_mode = #tpu.pipeline_mode<synchronous>, transform_indices = @transform_3, window_bounds = array<i64: 8, 1>}, {pipeline_mode = #tpu.pipeline_mode<synchronous>, transform_indices = @transform_4, window_bounds = array<i64: 16, 32>}, {pipeline_mode = #tpu.pipeline_mode<synchronous>, transform_indices = @transform_5, window_bounds = array<i64: 16, 1>}, {pipeline_mode = #tpu.pipeline_mode<synchronous>, transform_indices = @transform_6, window_bounds = array<i64: 32, 8>}, {pipeline_mode = #tpu.pipeline_mode<synchronous>, transform_indices = @transform_7, window_bounds = array<i64: 32, 1>}, {transform_indices = @transform_8, window_bounds = array<i64: 1>}, {transform_indices = @transform_9, window_bounds = array<i64: 1, 32, 128>}]} {
    %c0_i32 = arith.constant 0 : i32
    %0 = arith.cmpi eq, %arg2, %c0_i32 : i32
    %1 = arith.extui %0 : i1 to i32
    %c0_i32_0 = arith.constant 0 : i32
    %2 = arith.cmpi ne, %1, %c0_i32_0 : i32
    scf.if %2 {
      %c0_21 = arith.constant 0 : index
      %c0_22 = arith.constant 0 : index
      %c0_23 = arith.constant 0 : index
      %38 = vector.load %arg3[%c0_21, %c0_22, %c0_23] : memref<1x32x128xf32, #tpu.memory_space<vmem>>, vector<1x32x128xf32>
      %39 = vector.shape_cast %38 : vector<1x32x128xf32> to vector<32x128xf32>
      %40 = arith.truncf %39 : vector<32x128xf32> to vector<32x128xbf16>
      %c0_24 = arith.constant 0 : index
      %c0_25 = arith.constant 0 : index
      %41 = vector.load %arg5[%c0_24, %c0_25] : memref<8x32xbf16, #tpu.memory_space<vmem>>, vector<8x32xbf16>
      %cst_26 = arith.constant dense<0.000000e+00> : vector<8x128xf32>
      %42 = tpu.matmul %41, %40, %cst_26 {dimension_numbers = #tpu.dot_dimension_numbers<[1], [0], [0], [1], [0, 0, 1, 1], [], []>} : vector<8x32xbf16>, vector<32x128xbf16>, vector<8x128xf32> -> vector<8x128xf32>
      %c0_27 = arith.constant 0 : index
      %c0_28 = arith.constant 0 : index
      %43 = vector.load %arg6[%c0_27, %c0_28] : memref<8x1xf32, #tpu.memory_space<vmem>>, vector<8x1xf32>
      %44 = vector.broadcast %43 : vector<8x1xf32> to vector<8x128xf32>
      %45 = arith.addf %42, %44 : vector<8x128xf32>
      %c0_29 = arith.constant 0 : index
      %c0_30 = arith.constant 0 : index
      %46 = vector.load %arg13[%c0_29, %c0_30] : memref<8x128xf32, #tpu.memory_space<vmem>>, vector<8x128xf32>
      tpu.vector_store %arg13[%c0_29, %c0_30], %45 {strides = array<i32>} : memref<8x128xf32, #tpu.memory_space<vmem>>, vector<8x128xf32>,
      %cst_31 = arith.constant 0xFF800000 : f32
      %47 = vector.broadcast %cst_31 : f32 to vector<1x128xf32>
      %c0_32 = arith.constant 0 : index
      %c0_33 = arith.constant 0 : index
      %48 = vector.load %arg14[%c0_32, %c0_33] : memref<1x128xf32, #tpu.memory_space<vmem>>, vector<1x128xf32>
      tpu.vector_store %arg14[%c0_32, %c0_33], %47 {strides = array<i32>} : memref<1x128xf32, #tpu.memory_space<vmem>>, vector<1x128xf32>,
      %cst_34 = arith.constant 0.000000e+00 : f32
      %49 = vector.broadcast %cst_34 : f32 to vector<8x128xf32>
      %c0_35 = arith.constant 0 : index
      %c0_36 = arith.constant 0 : index
      %50 = vector.load %arg15[%c0_35, %c0_36] : memref<8x128xf32, #tpu.memory_space<vmem>>, vector<8x128xf32>
      tpu.vector_store %arg15[%c0_35, %c0_36], %49 {strides = array<i32>} : memref<8x128xf32, #tpu.memory_space<vmem>>, vector<8x128xf32>,
    } else {
    }
    %c0 = arith.constant 0 : index
    %c0_1 = arith.constant 0 : index
    %c0_2 = arith.constant 0 : index
    %3 = vector.load %arg4[%c0, %c0_1, %c0_2] : memref<1x32x128xf32, #tpu.memory_space<vmem>>, vector<1x32x128xf32>
    %4 = vector.shape_cast %3 : vector<1x32x128xf32> to vector<32x128xf32>
    %5 = arith.truncf %4 : vector<32x128xf32> to vector<32x128xbf16>
    %c0_3 = arith.constant 0 : index
    %c0_4 = arith.constant 0 : index
    %6 = vector.load %arg7[%c0_3, %c0_4] : memref<16x32xbf16, #tpu.memory_space<vmem>>, vector<16x32xbf16>
    %cst = arith.constant dense<0.000000e+00> : vector<16x128xf32>
    %7 = tpu.matmul %6, %5, %cst {dimension_numbers = #tpu.dot_dimension_numbers<[1], [0], [0], [1], [0, 0, 1, 1], [], []>} : vector<16x32xbf16>, vector<32x128xbf16>, vector<16x128xf32> -> vector<16x128xf32>
    %c0_5 = arith.constant 0 : index
    %c0_6 = arith.constant 0 : index
    %8 = vector.load %arg8[%c0_5, %c0_6] : memref<16x1xf32, #tpu.memory_space<vmem>>, vector<16x1xf32>
    %9 = vector.broadcast %8 : vector<16x1xf32> to vector<16x128xf32>
    %10 = arith.addf %7, %9 : vector<16x128xf32>
    %11 = vector.extract_strided_slice %10 {offsets = [0, 0], sizes = [8, 128], strides = [1, 1]} : vector<16x128xf32> to vector<8x128xf32>
    %12 = arith.truncf %11 : vector<8x128xf32> to vector<8x128xbf16>
    %13 = vector.extract_strided_slice %10 {offsets = [8, 0], sizes = [8, 128], strides = [1, 1]} : vector<16x128xf32> to vector<8x128xf32>
    %14 = arith.truncf %13 : vector<8x128xf32> to vector<8x128xbf16>
    %c0_7 = arith.constant 0 : index
    %c0_8 = arith.constant 0 : index
    %15 = vector.load %arg13[%c0_7, %c0_8] : memref<8x128xf32, #tpu.memory_space<vmem>>, vector<8x128xf32>
    %16 = arith.truncf %15 : vector<8x128xf32> to vector<8x128xbf16>
    %cst_9 = arith.constant dense<0.000000e+00> : vector<128x128xf32>
    %17 = tpu.matmul %12, %16, %cst_9 {dimension_numbers = #tpu.dot_dimension_numbers<[0], [0], [1], [1], [0, 1, 1, 1], [], []>} : vector<8x128xbf16>, vector<8x128xbf16>, vector<128x128xf32> -> vector<128x128xf32>
    %c0_10 = arith.constant 0 : index
    %c0_11 = arith.constant 0 : index
    %18 = vector.load %arg14[%c0_10, %c0_11] : memref<1x128xf32, #tpu.memory_space<vmem>>, vector<1x128xf32>
    %cst_12 = arith.constant dense<0xFF800000> : vector<128xf32>
    %19 = vector.multi_reduction <maximumf>, %17, %cst_12 [0] : vector<128x128xf32> to vector<128xf32>
    %20 = vector.shape_cast %19 : vector<128xf32> to vector<1x128xf32>
    %21 = arith.maximumf %18, %20 : vector<1x128xf32>
    %22 = arith.subf %18, %21 : vector<1x128xf32>
    %23 = math.exp %22 : vector<1x128xf32>
    %24 = vector.broadcast %21 : vector<1x128xf32> to vector<128x128xf32>
    %25 = arith.subf %17, %24 : vector<128x128xf32>
    %26 = math.exp %25 : vector<128x128xf32>
    %27 = arith.truncf %26 : vector<128x128xf32> to vector<128x128xbf16>
    %c0_13 = arith.constant 0 : index
    %c0_14 = arith.constant 0 : index
    %28 = vector.load %arg15[%c0_13, %c0_14] : memref<8x128xf32, #tpu.memory_space<vmem>>, vector<8x128xf32>
    %29 = vector.broadcast %23 : vector<1x128xf32> to vector<8x128xf32>
    %30 = arith.mulf %29, %28 : vector<8x128xf32>
    %cst_15 = arith.constant dense<0.000000e+00> : vector<8x128xf32>
    %31 = tpu.matmul %14, %27, %cst_15 {dimension_numbers = #tpu.dot_dimension_numbers<[1], [0], [0], [1], [0, 0, 1, 1], [], []>} : vector<8x128xbf16>, vector<128x128xbf16>, vector<8x128xf32> -> vector<8x128xf32>
    %32 = arith.addf %30, %31 : vector<8x128xf32>
    %c0_16 = arith.constant 0 : index
    %c0_17 = arith.constant 0 : index
    %33 = vector.load %arg15[%c0_16, %c0_17] : memref<8x128xf32, #tpu.memory_space<vmem>>, vector<8x128xf32>
    tpu.vector_store %arg15[%c0_16, %c0_17], %32 {strides = array<i32>} : memref<8x128xf32, #tpu.memory_space<vmem>>, vector<8x128xf32>,
    %c0_18 = arith.constant 0 : index
    %c0_19 = arith.constant 0 : index
    %34 = vector.load %arg14[%c0_18, %c0_19] : memref<1x128xf32, #tpu.memory_space<vmem>>, vector<1x128xf32>
    tpu.vector_store %arg14[%c0_18, %c0_19], %21 {strides = array<i32>} : memref<1x128xf32, #tpu.memory_space<vmem>>, vector<1x128xf32>,
    %c1_i32 = arith.constant 1 : i32
    %35 = arith.cmpi eq, %arg2, %c1_i32 : i32
    %36 = arith.extui %35 : i1 to i32
    %c0_i32_20 = arith.constant 0 : i32
    %37 = arith.cmpi ne, %36, %c0_i32_20 : i32
    scf.if %37 {
      %c4 = arith.constant 4 : index
      %c0_21 = arith.constant 0 : index
      %38 = vector.load %arg15[%c4, %c0_21] : memref<8x128xf32, #tpu.memory_space<vmem>>, vector<1x128xf32>
      %39 = tpu.reciprocal %38 : vector<1x128xf32> -> vector<1x128xf32>
      %c0_22 = arith.constant 0 : index
      %c0_23 = arith.constant 0 : index
      %40 = vector.load %arg15[%c0_22, %c0_23] : memref<8x128xf32, #tpu.memory_space<vmem>>, vector<8x128xf32>
      %41 = vector.broadcast %39 : vector<1x128xf32> to vector<8x128xf32>
      %42 = arith.mulf %40, %41 : vector<8x128xf32>
      %43 = arith.truncf %42 : vector<8x128xf32> to vector<8x128xbf16>
      %c0_24 = arith.constant 0 : index
      %c0_25 = arith.constant 0 : index
      %44 = vector.load %arg9[%c0_24, %c0_25] : memref<32x8xbf16, #tpu.memory_space<vmem>>, vector<32x8xbf16>
      %cst_26 = arith.constant dense<0.000000e+00> : vector<32x128xf32>
      %45 = tpu.matmul %44, %43, %cst_26 {dimension_numbers = #tpu.dot_dimension_numbers<[1], [0], [0], [1], [0, 0, 1, 1], [], []>} : vector<32x8xbf16>, vector<8x128xbf16>, vector<32x128xf32> -> vector<32x128xf32>
      %c0_27 = arith.constant 0 : index
      %c0_28 = arith.constant 0 : index
      %46 = vector.load %arg10[%c0_27, %c0_28] : memref<32x1xf32, #tpu.memory_space<vmem>>, vector<32x1xf32>
      %47 = vector.broadcast %46 : vector<32x1xf32> to vector<32x128xf32>
      %48 = arith.addf %45, %47 : vector<32x128xf32>
      %c0_29 = arith.constant 0 : index
      %49 = memref.load %arg11[%c0_29] : memref<1xf32, #tpu.memory_space<smem>>
      %50 = vector.broadcast %49 : f32 to vector<32x128xf32>
      %51 = arith.mulf %50, %48 : vector<32x128xf32>
      %c0_30 = arith.constant 0 : index
      %c0_31 = arith.constant 0 : index
      %c0_32 = arith.constant 0 : index
      %52 = vector.load %arg3[%c0_30, %c0_31, %c0_32] : memref<1x32x128xf32, #tpu.memory_space<vmem>>, vector<1x32x128xf32>
      %53 = vector.shape_cast %52 : vector<1x32x128xf32> to vector<32x128xf32>
      %54 = arith.addf %51, %53 : vector<32x128xf32>
      %c0_33 = arith.constant 0 : index
      %c0_34 = arith.constant 0 : index
      %c0_35 = arith.constant 0 : index
      %55 = vector.load %arg12[%c0_33, %c0_34, %c0_35] : memref<1x32x128xf32, #tpu.memory_space<vmem>>, vector<1x32x128xf32>
      %56 = vector.shape_cast %55 : vector<1x32x128xf32> to vector<32x128xf32>
      %57 = vector.shape_cast %54 : vector<32x128xf32> to vector<1x32x128xf32>
      tpu.vector_store %arg12[%c0_33, %c0_34, %c0_35], %57 {strides = array<i32>} : memref<1x32x128xf32, #tpu.memory_space<vmem>>, vector<1x32x128xf32>,
    } else {
    }
    return
  }
  func.func @transform_0(%arg0: i32, %arg1: i32, %arg2: i32) -> (i32, i32, i32) {
    %c0_i32 = arith.constant 0 : i32
    %c0_i32_0 = arith.constant 0 : i32
    return %arg0, %c0_i32, %arg1 : i32, i32, i32
  }
  func.func @transform_1(%arg0: i32, %arg1: i32, %arg2: i32) -> (i32, i32, i32) {
    %c0_i32 = arith.constant 0 : i32
    %c0_i32_0 = arith.constant 0 : i32
    return %arg0, %c0_i32, %arg2 : i32, i32, i32
  }
  func.func @transform_2(%arg0: i32, %arg1: i32, %arg2: i32) -> (i32, i32) {
    %c0_i32 = arith.constant 0 : i32
    %c0_i32_0 = arith.constant 0 : i32
    %c0_i32_1 = arith.constant 0 : i32
    return %c0_i32, %c0_i32_0 : i32, i32
  }
  func.func @transform_3(%arg0: i32, %arg1: i32, %arg2: i32) -> (i32, i32) {
    %c0_i32 = arith.constant 0 : i32
    %c0_i32_0 = arith.constant 0 : i32
    %c0_i32_1 = arith.constant 0 : i32
    return %c0_i32, %c0_i32_0 : i32, i32
  }
  func.func @transform_4(%arg0: i32, %arg1: i32, %arg2: i32) -> (i32, i32) {
    %c0_i32 = arith.constant 0 : i32
    %c0_i32_0 = arith.constant 0 : i32
    %c0_i32_1 = arith.constant 0 : i32
    return %c0_i32, %c0_i32_0 : i32, i32
  }
  func.func @transform_5(%arg0: i32, %arg1: i32, %arg2: i32) -> (i32, i32) {
    %c0_i32 = arith.constant 0 : i32
    %c0_i32_0 = arith.constant 0 : i32
    %c0_i32_1 = arith.constant 0 : i32
    return %c0_i32, %c0_i32_0 : i32, i32
  }
  func.func @transform_6(%arg0: i32, %arg1: i32, %arg2: i32) -> (i32, i32) {
    %c0_i32 = arith.constant 0 : i32
    %c0_i32_0 = arith.constant 0 : i32
    %c0_i32_1 = arith.constant 0 : i32
    return %c0_i32, %c0_i32_0 : i32, i32
  }
  func.func @transform_7(%arg0: i32, %arg1: i32, %arg2: i32) -> (i32, i32) {
    %c0_i32 = arith.constant 0 : i32
    %c0_i32_0 = arith.constant 0 : i32
    %c0_i32_1 = arith.constant 0 : i32
    return %c0_i32, %c0_i32_0 : i32, i32
  }
  func.func @transform_8(%arg0: i32, %arg1: i32, %arg2: i32) -> i32 {
    %c0_i32 = arith.constant 0 : i32
    %c0_i32_0 = arith.constant 0 : i32
    return %c0_i32 : i32
  }
  func.func @transform_9(%arg0: i32, %arg1: i32, %arg2: i32) -> (i32, i32, i32) {
    %c0_i32 = arith.constant 0 : i32
    %c0_i32_0 = arith.constant 0 : i32
    return %arg0, %c0_i32, %arg1 : i32, i32, i32
  }
}

</mosaic_0001>

<bundles_post_ra>
// kernel: tpu_custom_call.1
= control target key start
LH: loop header
LB: loop body
LE: loop exit
PB: predicated region body
PF: predicated region fallthrough
CT: control target
= control target key end

     0   :  { %s2149_s0 = inlined_call_operand.hbm [shape: f32[2,32,256], index: 0, kind: input, shape index: {}]   ;;  %s2150_s1 = inlined_call_operand.hbm [shape: f32[2,32,256], index: 1, kind: input, shape index: {}]   ;;  %s2151_s2 = inlined_call_operand.vmem [shape: bf16[8,32], index: 2, kind: input, shape index: {}]   ;;  %s2152_s3 = inlined_call_operand.vmem [shape: f32[8,1], index: 3, kind: input, shape index: {}]   ;;  %s2153_s4 = inlined_call_operand.vmem [shape: bf16[16,32], index: 4, kind: input, shape index: {}]   ;;  %s2154_s5 = inlined_call_operand.vmem [shape: f32[16,1], index: 5, kind: input, shape index: {}]   ;;  %s2155_s6 = inlined_call_operand.vmem [shape: bf16[32,8], index: 6, kind: input, shape index: {}]   ;;  %s2156_s7 = inlined_call_operand.vmem [shape: f32[32,1], index: 7, kind: input, shape index: {}]   ;;  %s2157_s8 = inlined_call_operand.<no memory space> [shape: f32[1], index: 8, kind: input, shape index: {}]   ;;  %s2158_s9 = inlined_call_operand.hbm [shape: f32[2,32,256], index: 9, kind: output, shape index: {}]  }
   0x1   :  { %2178 = sst [smem:[#allocation24_spill]] %s2149_s0 }
   0x2   :  { %2179 = sst [smem:[#allocation25_spill]] %s2155_s6 }
   0x3   :  { %2180 = sst [smem:[#allocation26_spill]] %s2156_s7 }
   0x4   :  { %2181 = sst [smem:[#allocation27_spill]] %s2158_s9 }
   0x5   :  { %14 = sst [smem:[#allocation5]] %s2157_s8 }
   0x6   :  { %15 = vsyncpa [#allocation7], 0 }
   0x7   :  { %17 = vsyncpa [#allocation7 + $0x1], 0 }
   0x8   :  { %18 = vsyncpa [#allocation10], 0 }
   0x9   :  { %20 = vsyncpa [#allocation10 + $0x1], 0 }
   0xa   :  { %21 = vsyncpa [#allocation8], 0 }
   0xb   :  { %23 = vsyncpa [#allocation8 + $0x1], 0  ;;  %s1680_s11 = smov 0   ;;  %s1682_s12 = smov 0  }
   0xc   :  { %s1684_s13 = smov 0   ;;  %s1686_s14 = smov 0  }
   0xd   :  { %s1688_s15 = smov 0   ;;  %s1690_s16 = smov 0  }
   0xe   :  { %s1692_s17 = smov 0   ;;  %s1694_s8 = smov 0  }
   0xf   :  { %s1696_s18 = smov 0   ;;  %s1698_s19 = smov 0  }
  0x10   :  { %s1700_s20 = smov 0   ;;  %s1702_s21 = smov 0  }
  0x11   :  { %s1704_s22 = smov 0  }
  0x12 LB: > { %2182 = sst [smem:[#allocation15_spill]] %s1572_s14  ;;  %s1100_s23 = sadd.s32 4294967295, %s1608_s22   ;;  %s1608_s22 = sphi %s1704_s22, %s29_s22   ;;  %s1604_s21 = sphi %s1702_s21, %s2237_s21   ;;  %s1600_s20 = sphi %s1700_s20, %s2228_s20   ;;  %s1596_s19 = sphi %s1698_s19, %s2227_s19   ;;  %s1592_s18 = sphi %s1696_s18, %s2236_s18   ;;  %s1588_s8 = sphi %s1694_s8, %s2226_s8   ;;  %s1584_s17 = sphi %s1692_s17, %s2225_s17   ;;  %s1580_s16 = sphi %s1690_s16, %s2235_s16   ;;  %s1576_s15 = sphi %s1688_s15, %s2234_s15   ;;  %s1572_s14 = sphi %s1686_s14, %s2233_s14   ;;  %s1568_s13 = sphi %s1684_s13, %s2232_s13   ;;  %s1564_s12 = sphi %s1682_s12, %s2231_s12   ;;  %s1560_s11 = sphi %s1680_s11, %s2230_s11  }
  0x13   : > { %2183 = sst [smem:[#allocation16_spill]] %s1588_s8  ;;  %s1101_s24 = sadd.s32 4294967294, %s1608_s22  }
  0x14   : > { %2184 = sst [smem:[#allocation17_spill]] %s1592_s18  ;;  %p64_p0 = scmp.ne.s32.totalorder %s1580_s16, %s1576_s15 }
  0x15   : > { %2185 = sst [smem:[#allocation18_spill]] %s1596_s19  ;;  %p2165_p1 = scmp.eq.s32.totalorder %s1608_s22, 0 }
  0x16   : > { %2186 = sst [smem:[#allocation19_spill]] %s1600_s20  ;;  %p70_p2 = scmp.ne.s32.totalorder %s1576_s15, %s1572_s14 }
  0x17   : > { %p1754_p3 = scmp.eq.s32.totalorder %s1100_s23, 0  ;;  %p271_p4 = scmp.eq.s32.totalorder %s1100_s23, 7 }
  0x18   : > { %p1760_p5 = por %p2165_p1, %p64_p0  ;;  %p277_p6 = scmp.eq.s32.totalorder %s1101_s24, 7 }
  0x19   : > { %p1766_p7 = por %p1754_p3, %p70_p2  ;;  %p1770_p8 = por %p271_p4, %p64_p0 }
  0x1a   : > { %p1774_p9 = por %p277_p6, %p70_p2  ;;  %p2164_p10 = scmp.lt.s32.totalorder %s1608_s22, 8 }
  0x1b   : > { %s2189_s29 = scalar_select %p1766_p7, 1, 0 }
  0x1c   : > { %s2190_s30 = scalar_select %p1770_p8, 1, 0 }
  0x1d   : > { %s2192_s10 = scalar_select %p1774_p9, 1, 0 }
  0x1e   : > { %2191 = sst [smem:[#allocation20_spill]] %s2190_s30  ;;  %s318_s23 = sand.u32 1, %s1580_s16  }
  0x1f   : > { %2193 = sst [smem:[#allocation21_spill]] %s2192_s10  ;;  %s1104_s26 = sshll.u32 %s318_s23, 5 }
  0x20   : > { %s1105_s25 = sshll.u32 %s1604_s21, 3  ;;  %s322_s24 = scalar_lea.vmem [#allocation6], %s1104_s26 }
  0x21   : > { %s327_s14 = sadd.s32 %s1600_s20, %s1105_s25  ;;  %s330_s9 = sshll.u32 %s322_s24, 4  ;;  %s1784_s9 = int_to_ptr.vmem [resolvable:$true] %s330_s9 }
  0x22   : > { %s1106_s8 = sshll.u32 %s327_s14, 7  ;;  %s2194_s0 = sld [smem:[#allocation24_spill]] }
  0x23   : > { %p1795_p11 = pnand %p2164_p10, %p1760_p5  ;;  %s1799_s14 = scalar_lea.sflag [#allocation7], %s318_s23 }
  0x25   : > { %p1408_p13 = pneg %p1795_p11 }
  0x28   : > { %s1789_s6 = scalar_lea.hbm %s2194_s0, %s1106_s8  ;;  %s1411_s18 = scalar_lea.hbm %s2194_s0, 2048 }
  0x29   : > { %s1406_s26 = scalar_lea.hbm %s1789_s6, 512  ;;  %p1412_p4 = scmp.lt.u32.totalorder %s1789_s6, %s2194_s0 }
  0x2a   : > { %p1407_p12 = scmp.ne.s32.totalorder %s1789_s6, %s1406_s26  ;;  %p1413_p5 = scmp.lt.u32.totalorder %s1411_s18, %s1406_s26 }
  0x2b   : > { %p1415_p10 = scmp.lt.u32.totalorder %s1406_s26, %s1789_s6 }
  0x2c   : > { %p1409_p0 = pnand %p1408_p13, %p1407_p12  ;;  %p1414_p6 = por %p1413_p5, %p1412_p4 }
  0x2e   : > { %p1410_p2 = pneg %p1409_p0  ;;  %p1416_p1 = por %p1415_p10, %p1414_p6 }
  0x30   : > { %p1417_p9 = pnand %p1416_p1, %p1410_p2 }
  0x32   : > { %1420 = shalt.err (!%p1417_p9)
}
  0x33   : > { %s1421_s23 = scalar_lea.vmem %s1784_s9, 512  ;;  %s1610_s7 = smov [#allocation6]  }
  0x34   : > { %p1422_p12 = scmp.ne.s32.totalorder %s1784_s9, %s1421_s23  ;;  %s1426_s8 = sshll.u32 %s1610_s7, 4  ;;  %s1427_s8 = int_to_ptr.vmem [resolvable:$false] %s1426_s8 }
  0x35   : > { %s1428_s28 = scalar_lea.vmem %s1427_s8, 1024  ;;  %p1429_p7 = scmp.lt.s32.totalorder %s1784_s9, %s1427_s8 }
  0x36   : > { %p1424_p0 = pnand %p1422_p12, %p1408_p13  ;;  %p1430_p4 = scmp.lt.s32.totalorder %s1428_s28, %s1421_s23 }
  0x38   : > { %p1425_p8 = pneg %p1424_p0  ;;  %p1431_p5 = por %p1430_p4, %p1429_p7 }
  0x3a   : > { %p1432_p10 = pnand %p1431_p5, %p1425_p8 }
  0x3c   : > { %1435 = shalt.err (!%p1432_p10)
}
  0x3d   : > { %s2168_s26 = smov 256   ;;  %s2169_s18 = smov 128  }
  0x3e   : > { %s2170_s24 = smov 8   ;;  %p1110_p1 = scmp.ge.s32.totalorder %s1608_s22, 1 }
  0x3f   : > { %1234 = dma.hbm_to_vmem [thread:$0]  (!%p1795_p11), %s1789_s6, 512, %s1784_s9, %s1799_s14, %s2168_s26, %s2169_s18, %s2170_s24  }
  0x40   : > { %p360_p7 = scmp.lt.s32.totalorder %s1608_s22, 9  ;;  %s41_s8 = sadd.s32 1, %s1596_s19 }
  0x41   : > { %p42_p9 = scmp.ge.s32.totalorder %s41_s8, 2  ;;  %p98_p13 = scmp.ne.s32.totalorder %s1564_s12, %s1560_s11 }
  0x42   : > { %p1833_p8 = pnand %p1110_p1, %p360_p7  ;;  %s2198_s6 = sadd.s32 1, %s1600_s20 }
  0x43   : > { %s2239_s8 = smov (%p42_p9, %s41_s8), 0  ;;  %s2241_s6 = smov (!%p42_p9, %s2198_s6), %s1600_s20 }
  0x44   : > { %2197 = sst [smem:[#allocation22_spill]] %s2239_s8  ;;  %s81_s9 = ssub.s32 %s1596_s19, %s2239_s8 }
  0x45   : > { %p92_p11 = scmp.ne.s32.totalorder %s1568_s13, %s1564_s12  ;;  %p46_p2 = scmp.ge.s32.totalorder %s2241_s6, 2 }
  0x46   : > { %p1852_p6 = por %p98_p13, %p1754_p3  ;;  %s340_s28 = sand.u32 1, %s1568_s13  }
  0x47   : > { %s349_s26 = sadd.s32 %s1596_s19, %s1105_s25  ;;  %s2243_s6 = smov (%p46_p2, %s2241_s6), 0 }
  0x48   : > { %s2199_s14 = scalar_select %p1852_p6, 1, 0 }
  0x49   : > { %2200 = sst [smem:[#allocation23_spill]] %s2243_s6  ;;  %s2201_s11 = sadd.s32 1, %s1604_s21 }
  0x4a   : > { %s2245_s11 = smov (!%p46_p2, %s2201_s11), %s1604_s21  ;;  %s53_s18 = ssub.s32 %s1600_s20, %s2243_s6 }
  0x4b   : > { %p2202_p12 = scmp.eq.s32.totalorder %s1608_s22, 0  ;;  %p50_p3 = scmp.ge.s32.totalorder %s2245_s11, 2 }
  0x4c   : > { %s1107_s27 = sshll.u32 %s340_s28, 5  ;;  %s1109_s25 = sshll.u32 %s349_s26, 7 }
  0x4d   : > { %p1869_p0 = por %p92_p11, %p2202_p12  ;;  %s2247_s11 = smov (%p50_p3, %s2245_s11), 0 }
  0x4e   : > { %s1878_s0 = scalar_lea.hbm %s2150_s1, %s1109_s25  ;;  %s52_s6 = ssub.s32 %s1604_s21, %s2247_s11 }
  0x4f   : > { %s344_s8 = scalar_lea.vmem [#allocation9], %s1107_s27  ;;  %s54_s19 = sor.u32 %s53_s18, %s52_s6 }
  0x50   : > { %s352_s20 = sshll.u32 %s344_s8, 4  ;;  %s82_s30 = sor.u32 %s81_s9, %s52_s6  ;;  %s1882_s20 = int_to_ptr.vmem [resolvable:$true] %s352_s20 }
  0x51   : > { %p55_p4 = scmp.eq.s32.totalorder %s54_s19, 0  ;;  %p83_p5 = scmp.eq.s32.totalorder %s82_s30, 0 }
  0x52   : > { %p2204_p10 = scmp.lt.s32.totalorder %s1608_s22, 8  ;;  %s2206_s23 = sadd.s32 1, %s1580_s16 }
  0x53   : > { %s1895_s10 = scalar_select %p55_p4, %s1580_s16, %s2206_s23  }
  0x54   : > { %p1888_p1 = pnand %p2204_p10, %p1869_p0  ;;  %s2207_s8 = sadd.s32 1, %s1568_s13 }
  0x55   : > { %s1900_s27 = scalar_select %p83_p5, %s1568_s13, %s2207_s8  }
  0x56   : > { %s1902_s18 = scalar_lea.sflag [#allocation10], %s340_s28  ;;  %s1436_s19 = scalar_lea.hbm %s1878_s0, 512 }
  0x57   : > { %p1437_p7 = scmp.ne.s32.totalorder %s1878_s0, %s1436_s19  ;;  %p1438_p9 = pneg %p1888_p1 }
  0x58   : > { %s1441_s6 = scalar_lea.hbm %s2150_s1, 2048  ;;  %p1442_p2 = scmp.lt.u32.totalorder %s1878_s0, %s2150_s1 }
  0x59   : > { %p1439_p13 = pnand %p1438_p9, %p1437_p7  ;;  %p1443_p12 = scmp.lt.u32.totalorder %s1441_s6, %s1436_s19 }
  0x5a   : > { %p1445_p3 = scmp.lt.u32.totalorder %s1436_s19, %s1878_s0 }
  0x5b   : > { %p1440_p11 = pneg %p1439_p13  ;;  %p1444_p0 = por %p1443_p12, %p1442_p2 }
  0x5d   : > { %p1446_p4 = por %p1445_p3, %p1444_p0 }
  0x5f   : > { %p1447_p5 = pnand %p1446_p4, %p1440_p11 }
  0x61   : > { %1450 = shalt.err (!%p1447_p5)
}
  0x62   : > { %s1451_s28 = scalar_lea.vmem %s1882_s20, 512  ;;  %s1614_s23 = smov [#allocation9]  }
  0x63   : > { %p1452_p10 = scmp.ne.s32.totalorder %s1882_s20, %s1451_s28  ;;  %s1456_s8 = sshll.u32 %s1614_s23, 4  ;;  %s1457_s8 = int_to_ptr.vmem [resolvable:$false] %s1456_s8 }
  0x64   : > { %s1458_s30 = scalar_lea.vmem %s1457_s8, 1024  ;;  %p1459_p6 = scmp.lt.s32.totalorder %s1882_s20, %s1457_s8 }
  0x65   : > { %p1454_p7 = pnand %p1452_p10, %p1438_p9  ;;  %p1460_p2 = scmp.lt.s32.totalorder %s1458_s30, %s1451_s28 }
  0x67   : > { %p1455_p13 = pneg %p1454_p7  ;;  %p1461_p12 = por %p1460_p2, %p1459_p6 }
  0x69   : > { %p1462_p0 = pnand %p1461_p12, %p1455_p13 }
  0x6b   : > { %1465 = shalt.err (!%p1462_p0)
}
  0x6c   : > { %s2208_s19 = smov 8   ;;  %s2209_s24 = smov 128  }
  0x6d   : > { %s2210_s6 = smov 256   ;;  %364 = sbr.rel (%p1833_p8) target bundleno = 1488 (0x5d0), region = 56 }
  0x6e   : > { %1237 = dma.hbm_to_vmem [thread:$0]  (!%p1888_p1), %s1878_s0, 512, %s1882_s20, %s1902_s18, %s2210_s6, %s2209_s24, %s2208_s19  }
  0x6f   : > { %s1936_s9 = sand.u32 (!%p1833_p8), 1, %s1576_s15   ;;  %p2211_p6 = scmp.ne.s32.totalorder (!%p1833_p8), %s2189_s29, 0 }
  0x70   : > { %s1111_s25 = sshll.u32 (!%p1833_p8), %s1936_s9, 5  ;;  %s367_s28 = scalar_lea.sflag (!%p1833_p8), [#allocation7], %s1936_s9 }
  0x71   : > { %s1940_s23 = scalar_lea.vmem (!%p1833_p8), [#allocation6], %s1111_s25 }
  0x74   : > { %1547 = dma.done.wait (%p2211_p6), %s367_s28, 512  }
  0x75   : > { %1549 = vsyncadd (%p2211_p6), %s367_s28, 4294966784  ;;  %s375_s0 = sand.u32 1, %s1564_s12   ;;  %p2212_p8 = scmp.ne.s32.totalorder %s2199_s14, 0 }
  0x76   : > { %s1112_s20 = sshll.u32 %s375_s0, 5  ;;  %s376_s7 = scalar_lea.sflag [#allocation10], %s375_s0 }
  0x77   : > { %s1947_s26 = scalar_lea.vmem [#allocation9], %s1112_s20 }
  0x78   : > { %1551 = dma.done.wait (%p2212_p8), %s376_s7, 512  }
  0x79   : > { %1553 = vsyncadd (%p2212_p8), %s376_s7, 4294966784  ;;  %s1953_s18 = scalar_lea.vmem [#allocation11], %s1111_s25  ;;  %p1114_p1 = scmp.ne.s32.totalorder %s1584_s17, 0 }
  0x7a   : > { %v424_v0 = vld [vmem:[%s1940_s23] sm:$0xff] (!%p1114_p1)  ;;  %v425_v1 = vld [vmem:[%s1940_s23 + $0x8] sm:$0xff] (!%p1114_p1)  ;;  %v426_v2 = vld [vmem:[%s1940_s23 + $0x10] sm:$0xff] (!%p1114_p1)  ;;  %v1615_v3 = vmov (!%p1114_p1), 0.0   ;;  %vm1616_vm0 = vmmov (!%p1114_p1), 0   ;;  %v1617_v7 = vmov (!%p1114_p1), 0  }
  0x7b   : > { %423 = sbr.rel (%p1114_p1) target bundleno = 347 (0x15b), region = 68  ;;  %1163 = vmatprep.subr.bf16.mxu0 (!%p1114_p1), %v1615_v3  ;;  %483 = vst [vmem:[#allocation4] sm:$0xff] (!%p1114_p1), %v1615_v3  ;;  %v428_v4 = vpack.c.bf16 (!%p1114_p1), %v425_v1, %v424_v0  ;;  %v427_v5 = vld [vmem:[%s1940_s23 + $0x18] sm:$0xff] (!%p1114_p1)  ;;  %1167 = vmatprep.mubr.msk.bf16.mxu0 (!%p1114_p1), %vm1616_vm0, %v1615_v3  ;;  %v431_v6 = vld [vmem:[%s2152_s3] sm:$0xff] (!%p1114_p1)  ;;  %vm437_vm1 = vcmask (!%p1114_p1), 261120   ;;  %v1618_v10 = vmov (!%p1114_p1), -inf  }
  0x7c   : > { %1362 = vset.pattern.permute.xlu0 (!%p1114_p1), %v1617_v7  ;;  %v429_v8 = vpack.c.bf16 (!%p1114_p1), %v427_v5, %v426_v2  ;;  %v430_v9 = vld [vmem:[%s2151_s2] sm:$0xf] (!%p1114_p1)  ;;  %482 = vst [vmem:[#allocation3] sm:$0x1] (!%p1114_p1), %v1618_v10 }
  0x7d   : > { %1164 = vmatpush3.bf16.msra.mxu0 (!%p1114_p1), %v428_v4  ;;  %434 = vperm.xlu0 (!%p1114_p1), %1362, %v431_v6  }
  0x7e   : > { %1165 = vmatprep.subr.bf16.mxu0 (!%p1114_p1), %v1615_v3 }
  0x81   : > { %1166 = vmatpush3.bf16.msra.mxu0 (!%p1114_p1), %v429_v8 }
  0x84   : > { %1168 = vmatmul.mubr.msk.bf16.vlgmr.msra.gmra.mrb[0].mxu0 %vm437_vm1, %v430_v9 }
  0xfc   : > { %v435_v11 = vpop.permute.xlu0 %434 }
 0x157   : > { %v475_v12 = vpop.f32.mrb[0].mxu0 }
 0x158   : > { %v476_v13 = vadd.f32 %v475_v12, %v435_v11  ;;  %v1169_v14 = vpop.f32.mrb[1].mxu0 }
 0x159   : > { %v478_v15 = vpop.f32.mrb[2].mxu0 }
 0x15a   : > { %481 = vst [vmem:[#allocation2] sm:$0xff] %v476_v13  ;;  %v1170_v16 = vpop.f32.mrb[3].mxu0 }
 0x15b PF: > { %v484_v17 = vld [vmem:[%s1947_s26] sm:$0xff]  ;;  %v485_v18 = vld [vmem:[%s1947_s26 + $0x8] sm:$0xff]  ;;  %v486_v19 = vld [vmem:[%s1947_s26 + $0x10] sm:$0xff]  ;;  %v1619_v20 = vmov 0.0   ;;  %vm1620_vm2 = vmmov 0   ;;  %v1621_v23 = vmov 0   ;;  %v727_v15 = vlaneseq }
 0x15c   : > { %1171 = vmatprep.subr.bf16.mxu0 %v1619_v20  ;;  %v488_v21 = vpack.c.bf16 %v485_v18, %v484_v17  ;;  %v487_v22 = vld [vmem:[%s1947_s26 + $0x18] sm:$0xff]  ;;  %1175 = vmatprep.mubr.msk.bf16.mxu0 %vm1620_vm2, %v1619_v20  ;;  %v492_v24 = vld [vmem:[%s2154_s5] sm:$0xff]  ;;  %vm509_vm3 = vcmask 261120   ;;  %vm599_vm4 = vcmask 1043456   ;;  %vm574_vm5 = vcmask 64512   ;;  %p1126_p9 = scmp.ne.s32.totalorder %s1584_s17, 1 }
 0x15d   : > { %1363 = vset.pattern.permute.xlu0 %v1621_v23  ;;  %1364 = vset.pattern.permute.xlu1 %v1621_v23  ;;  %v493_v25 = vld [vmem:[%s2154_s5 + $0x8] sm:$0xff]  ;;  %v489_v26 = vpack.c.bf16 %v487_v22, %v486_v19  ;;  %v1365_v27 = vld [vmem:[%s2153_s4] sm:$0xff]   ;;  %v728_v18 = vshrl.u32 %v727_v15, 7  ;;  %s2213_s26 = sld [smem:[#allocation25_spill]] (!%p1126_p9)  ;;  %s2214_s8 = sld [smem:[#allocation26_spill]] (!%p1126_p9) }
 0x15e   : > { %1172 = vmatpush3.bf16.msra.mxu0 %v488_v21  ;;  %496 = vperm.xlu0 %1363, %v492_v24   ;;  %v700_v21 = vld [vmem:[#allocation3] sm:$0x1]  ;;  %s948_s7 = sld [smem:[#allocation5]] (!%p1126_p9) }
 0x15f   : > { %1173 = vmatprep.subr.bf16.mxu0 %v1619_v20  ;;  %501 = vperm.xlu1 %1364, %v493_v25   ;;  %v2016_v23 = vsub.s32 0, %v728_v18 }
 0x161   : > { %v556_v28 = vld [vmem:[#allocation2] sm:$0xff] }
 0x162   : > { %1174 = vmatpush3.bf16.msra.mxu0 %v489_v26  ;;  %v557_v29 = vpack.c.bf16 %v556_v28, %v556_v28 }
 0x163   : > { %s2215_s30 = smov (!%p1126_p9), %s2214_s8 }
 0x164   : > { %1223 = vmatprep.subr.msk.bf16.mxu1 %vm599_vm4, %v557_v29  ;;  %v601_v30 = vsel %vm599_vm4, %v557_v29, 0 }
 0x165   : > { %1176 = vmatmul.mubr.msk.bf16.vlgmr.msra.gmra.mrb[0].mxu0 %vm509_vm3, %v1365_v27  ;;  %1180 = vmatpush3.bf16.msra.mxu1 %v601_v30 }
 0x166   : > { %1197 = vmatprep.subr.bf16.mxu1 %v1619_v20 }
 0x1dd   : > { %v497_v31 = vpop.permute.xlu0 %496 }
 0x238   : > { %v547_v32 = vpop.f32.mrb[0].mxu0 }
 0x239   : > { %v548_v33 = vadd.f32 %v547_v32, %v497_v31  ;;  %v1177_v34 = vpop.f32.mrb[1].mxu0 }
 0x23a   : > { %v1986_v35 = vpop.f32.mrb[2].mxu0 }
 0x23b   : > { %v554_v36 = vpack.c.bf16 %v548_v33, %v548_v33  ;;  %v1178_v37 = vpop.f32.mrb[3].mxu0 }
 0x23d   : > { %558 = vxpose.xlu0.c.b16.start.end [1/1] (short) %v554_v36, 128 }
 0x2a3   : > { %v566_v38 = vpop.trf.xlu0 }
 0x2a4   : > { %1181 = vmatprep.mubr.msk.bf16.mxu1 %vm574_vm5, %v566_v38 }
 0x2a7   : > { %v567_v39 = vpop.trf.xlu0 }
 0x2a8   : > { %1182 = vmatmul.mubr.msk.bf16.vlgmr.msra.gmra.mrb[0].mxu1 %vm574_vm5, %v567_v39 }
 0x2ab   : > { %v568_v40 = vpop.trf.xlu0 }
 0x2ac   : > { %1185 = vmatprep.mubr.msk.bf16.mxu1 %vm574_vm5, %v568_v40 }
 0x2af   : > { %v569_v41 = vpop.trf.xlu0 }
 0x2b0   : > { %1186 = vmatmul.mubr.msk.bf16.gmra.mrb[4].mxu1 %vm574_vm5, %v569_v41 }
 0x2b3   : > { %v570_v42 = vpop.trf.xlu0 }
 0x2b4   : > { %1189 = vmatprep.mubr.msk.bf16.mxu1 %vm574_vm5, %v570_v42 }
 0x2b7   : > { %v571_v43 = vpop.trf.xlu0 }
 0x2b8   : > { %1190 = vmatmul.mubr.msk.bf16.gmra.mrb[8].mxu1 %vm574_vm5, %v571_v43 }
 0x2bb   : > { %v572_v44 = vpop.trf.xlu0 }
 0x2bc   : > { %1193 = vmatprep.mubr.msk.bf16.mxu1 %vm574_vm5, %v572_v44 }
 0x2bf   : > { %v573_v45 = vpop.trf.xlu0 }
 0x2c0   : > { %1194 = vmatmul.mubr.msk.bf16.gmra.mrb[12].mxu1 %vm574_vm5, %v573_v45 }
 0x2c1   : > { %1213 = vmatprep.mubr.msk.bf16.mxu1 %vm1620_vm2, %v1619_v20 }
 0x37b   : > { %v1183_v46 = vpop.f32.mrb[0].mxu1 }
 0x37c   : > { %v637_v47 = vpop.f32.mrb[1].mxu1 }
 0x37d   : > { %v1184_v48 = vpop.f32.mrb[2].mxu1 }
 0x37e   : > { %v640_v49 = vpop.f32.mrb[3].mxu1 }
 0x383   : > { %v1998_v50 = vpop.f32.mrb[4].mxu1 }
 0x384   : > { %v703_v51 = vmax.f32 %v1183_v46, %v1998_v50  ;;  %v653_v52 = vpop.f32.mrb[5].mxu1 }
 0x385   : > { %v701_v53 = vmax.f32 %v637_v47, %v653_v52  ;;  %v2001_v54 = vpop.f32.mrb[6].mxu1 }
 0x386   : > { %v704_v55 = vmax.f32 %v1184_v48, %v2001_v54  ;;  %v656_v56 = vpop.f32.mrb[7].mxu1 }
 0x387   : > { %v702_v57 = vmax.f32 %v640_v49, %v656_v56 }
 0x38b   : > { %v2004_v58 = vpop.f32.mrb[8].mxu1 }
 0x38c   : > { %v707_v59 = vmax.f32 %v703_v51, %v2004_v58  ;;  %v669_v60 = vpop.f32.mrb[9].mxu1 }
 0x38d   : > { %v705_v61 = vmax.f32 %v701_v53, %v669_v60  ;;  %v2007_v62 = vpop.f32.mrb[10].mxu1 }
 0x38e   : > { %v708_v63 = vmax.f32 %v704_v55, %v2007_v62  ;;  %v672_v0 = vpop.f32.mrb[11].mxu1 }
 0x38f   : > { %v706_v1 = vmax.f32 %v702_v57, %v672_v0 }
 0x393   : > { %v2010_v2 = vpop.f32.mrb[12].mxu1 }
 0x394   : > { %v711_v3 = vmax.f32 %v707_v59, %v2010_v2  ;;  %v685_v4 = vpop.f32.mrb[13].mxu1 }
 0x395   : > { %v709_v5 = vmax.f32 %v705_v61, %v685_v4  ;;  %v2013_v6 = vpop.f32.mrb[14].mxu1 }
 0x396   : > { %v712_v7 = vmax.f32 %v708_v63, %v2013_v6  ;;  %v688_v8 = vpop.f32.mrb[15].mxu1 }
 0x397   : > { %v710_v9 = vmax.f32 %v706_v1, %v688_v8 }
 0x398   : > { %v714_v10 = vmax.f32 %v711_v3, %v712_v7 }
 0x399   : > { %v713_v11 = vmax.f32 %v709_v5, %v710_v9 }
 0x39b   : > { %v715_v12 = vmax.f32 %v713_v11, %v714_v10 }
 0x39d   : > { %v716_v13 = vrot.slane %v715_v12, 4 }
 0x39f   : > { %v717_v14 = vmax.f32 %v715_v12, %v716_v13 }
 0x3a1   : > { %v718_v16 = vrot.slane %v717_v14, 2 }
 0x3a3   : > { %v719_v17 = vmax.f32 %v717_v14, %v718_v16 }
 0x3a5   : > { %v720_v19 = vrot.slane %v719_v17, 1 }
 0x3a7   : > { %v721_v22 = vmax.f32 %v719_v17, %v720_v19 }
 0x3a9   : > { %v722_v24 = vmax.f32 %v700_v21, %v721_v22 }
 0x3ab   : > { %v730_v25 = vrot.slane %v722_v24, %v2016_v23  ;;  %838 = vst [vmem:[#allocation3] sm:$0x1] %v722_v24  ;;  %v723_v26 = vsub.f32 %v700_v21, %v722_v24 }
 0x3ad   : > { %v745_v27 = vsub.f32 %v688_v8, %v730_v25  ;;  %v732_v28 = vsub.f32 %v637_v47, %v730_v25  ;;  %v733_v29 = vsub.f32 %v640_v49, %v730_v25  ;;  %v734_v30 = vsub.f32 %v1183_v46, %v730_v25 }
 0x3ae   : > { %v735_v31 = vsub.f32 %v1184_v48, %v730_v25  ;;  %v736_v32 = vsub.f32 %v653_v52, %v730_v25  ;;  %v737_v33 = vsub.f32 %v656_v56, %v730_v25  ;;  %v738_v34 = vsub.f32 %v1998_v50, %v730_v25 }
 0x3af   : > { %v774_v36 = vmul.f32 1.442695, %v745_v27  ;;  %v748_v37 = vmul.f32 1.442695, %v732_v28  ;;  %v750_v38 = vmul.f32 1.442695, %v733_v29  ;;  %v739_v39 = vsub.f32 %v2001_v54, %v730_v25 }
 0x3b0   : > { %v752_v40 = vmul.f32 1.442695, %v734_v30  ;;  %v740_v41 = vsub.f32 %v669_v60, %v730_v25  ;;  %v754_v42 = vmul.f32 1.442695, %v735_v31  ;;  %v756_v43 = vmul.f32 1.442695, %v736_v32 }
 0x3b1   : > { %1366 = vpow2.f32 %v774_v36  ;;  %v758_v44 = vmul.f32 1.442695, %v737_v33  ;;  %v741_v45 = vsub.f32 %v672_v0, %v730_v25  ;;  %v742_v46 = vsub.f32 %v2004_v58, %v730_v25  ;;  %v788_v28 = vld [vmem:[#allocation4] sm:$0xff] }
 0x3b2   : > { %1368 = vpow2.f32 %v748_v37  ;;  %v743_v47 = vsub.f32 %v2007_v62, %v730_v25  ;;  %v744_v48 = vsub.f32 %v685_v4, %v730_v25  ;;  %v746_v49 = vsub.f32 %v2010_v2, %v730_v25  ;;  %v858_v37 = vld [vmem:[%s2214_s8 + $0x10] sm:$0xff] (!%p1126_p9) }
 0x3b3   : > { %1370 = vpow2.f32 %v750_v38  ;;  %v760_v50 = vmul.f32 1.442695, %v738_v34  ;;  %v747_v51 = vsub.f32 %v2013_v6, %v730_v25  ;;  %v762_v52 = vmul.f32 1.442695, %v739_v39  ;;  %v502_v25 = vpop.permute.xlu1 %501  ;;  %v856_v38 = vld [vmem:[%s2215_s30] sm:$0xff] (!%p1126_p9)  ;;  %v859_v39 = vld [vmem:[%s2215_s30 + $0x18] sm:$0xff] (!%p1126_p9) }
 0x3b4   : > { %1372 = vpow2.f32 %v752_v40  ;;  %v764_v53 = vmul.f32 1.442695, %v740_v41  ;;  %v766_v54 = vmul.f32 1.442695, %v741_v45  ;;  %v768_v55 = vmul.f32 1.442695, %v742_v46 }
 0x3b5   : > { %1374 = vpow2.f32 %v754_v42  ;;  %v770_v56 = vmul.f32 1.442695, %v743_v47  ;;  %v772_v57 = vmul.f32 1.442695, %v744_v48  ;;  %v776_v59 = vmul.f32 1.442695, %v746_v49 }
 0x3b6   : > { %1376 = vpow2.f32 %v756_v43  ;;  %v778_v61 = vmul.f32 1.442695, %v747_v51  ;;  %v724_v63 = vmul.f32 1.442695, %v723_v26  ;;  %v551_v26 = vadd.f32 %v1986_v35, %v502_v25  ;;  %v857_v40 = vld [vmem:[%s2215_s30 + $0x8] sm:$0xff] (!%p1126_p9) }
 0x3b7   : > { %1378 = vpow2.f32 %v758_v44  ;;  %v1622_v35 = vmov (!%p1126_p9), 0   ;;  %v1403_v47 = vld [vmem:[%s2213_s26 + $0x8] sm:$0xff] (!%p1126_p9)  }
 0x3b8   : > { %1380 = vpow2.f32 %v760_v50  ;;  %v555_v27 = vpack.c.bf16 %v551_v26, %v551_v26  ;;  %1401 = vset.pattern.permute.xlu1 (!%p1126_p9), %v1622_v35  ;;  %1400 = vset.pattern.permute.xlu0 (!%p1126_p9), %v1622_v35  ;;  %v949_v50 = vstv (!%p1126_p9), %s948_s7 }
 0x3b9   : > { %1382 = vpow2.f32 %v762_v52  ;;  %872 = vperm.xlu1 (!%p1126_p9), %1401, %v858_v37   ;;  %862 = vperm.xlu0 (!%p1126_p9), %1400, %v856_v38  }
 0x3ba   : > { %1384 = vpow2.f32 %v764_v53 }
 0x3bb   : > { %v1367_v58 = vpop.eup %1366  ;;  %1386 = vpow2.f32 %v766_v54  ;;  %v956_v54 = vld [vmem:[%s1940_s23 + $0x10] sm:$0xff] (!%p1126_p9) }
 0x3bc   : > { %v1369_v60 = vpop.eup %1368  ;;  %1388 = vpow2.f32 %v768_v55 }
 0x3bd   : > { %v1371_v62 = vpop.eup %1370  ;;  %1390 = vpow2.f32 %v770_v56  ;;  %877 = vperm.xlu1 (!%p1126_p9), %1401, %v859_v39   ;;  %867 = vperm.xlu0 (!%p1126_p9), %1400, %v857_v40  }
 0x3be   : > { %v1373_v0 = vpop.eup %1372  ;;  %v780_v1 = vpack.c.bf16 %v1371_v62, %v1369_v60  ;;  %1392 = vpow2.f32 %v772_v57 }
 0x3bf   : > { %v1375_v2 = vpop.eup %1374  ;;  %1394 = vpow2.f32 %v776_v59  ;;  %v954_v59 = vld [vmem:[%s1940_s23] sm:$0xff] (!%p1126_p9) }
 0x3c0   : > { %v1377_v3 = vpop.eup %1376  ;;  %1198 = vmatpush3.bf16.msra.mxu1 %v780_v1  ;;  %v781_v4 = vpack.c.bf16 %v1375_v2, %v1373_v0  ;;  %1396 = vpow2.f32 %v778_v61 }
 0x3c1   : > { %v1379_v5 = vpop.eup %1378  ;;  %1199 = vmatprep.subr.bf16.mxu1 %v1619_v20  ;;  %1398 = vpow2.f32 %v724_v63  ;;  %v957_v63 = vld [vmem:[%s1940_s23 + $0x18] sm:$0xff] (!%p1126_p9) }
 0x3c2   : > { %v1381_v6 = vpop.eup %1380  ;;  %v782_v7 = vpack.c.bf16 %v1379_v5, %v1377_v3  ;;  %v955_v3 = vld [vmem:[%s1940_s23 + $0x8] sm:$0xff] (!%p1126_p9) }
 0x3c3   : > { %v1383_v8 = vpop.eup %1382 }
 0x3c4   : > { %v1385_v9 = vpop.eup %1384  ;;  %1200 = vmatpush3.bf16.msra.mxu1 %v781_v4  ;;  %v783_v10 = vpack.c.bf16 %v1383_v8, %v1381_v6 }
 0x3c5   : > { %v1387_v11 = vpop.eup %1386  ;;  %1201 = vmatprep.subr.bf16.mxu1 %v1619_v20 }
 0x3c6   : > { %v1389_v12 = vpop.eup %1388  ;;  %v784_v13 = vpack.c.bf16 %v1387_v11, %v1385_v9 }
 0x3c7   : > { %v1391_v14 = vpop.eup %1390 }
 0x3c8   : > { %v1393_v15 = vpop.eup %1392  ;;  %1202 = vmatpush3.bf16.msra.mxu1 %v782_v7  ;;  %v785_v16 = vpack.c.bf16 %v1391_v14, %v1389_v12 }
 0x3c9   : > { %v1395_v17 = vpop.eup %1394  ;;  %1203 = vmatprep.subr.bf16.mxu1 %v1619_v20  ;;  %v786_v18 = vpack.c.bf16 %v1367_v58, %v1393_v15 }
 0x3ca   : > { %v1397_v19 = vpop.eup %1396 }
 0x3cb   : > { %v1399_v21 = vpop.eup %1398  ;;  %v787_v22 = vpack.c.bf16 %v1397_v19, %v1395_v17 }
 0x3cc   : > { %1204 = vmatpush3.bf16.msra.mxu1 %v783_v10  ;;  %v793_v24 = vrot.slane %v1399_v21, %v2016_v23 }
 0x3cd   : > { %1205 = vmatprep.subr.bf16.mxu1 %v1619_v20 }
 0x3ce   : > { %v795_v29 = vmul.f32 %v793_v24, %v788_v28 }
 0x3d0   : > { %1206 = vmatpush3.bf16.msra.mxu1 %v784_v13 }
 0x3d1   : > { %1207 = vmatprep.subr.bf16.mxu1 %v1619_v20 }
 0x3d4   : > { %1208 = vmatpush3.bf16.msra.mxu1 %v785_v16 }
 0x3d5   : > { %1209 = vmatprep.subr.bf16.mxu1 %v1619_v20 }
 0x3d8   : > { %1210 = vmatpush3.bf16.msra.mxu1 %v786_v18 }
 0x3d9   : > { %1211 = vmatprep.subr.bf16.mxu1 %v1619_v20  ;;  %v1402_v20 = vld [vmem:[%s2213_s26] sm:$0xff] (!%p1126_p9)  }
 0x3da   : > { %1219 = vmatprep.mubr.msk.bf16.mxu0 (!%p1126_p9), %vm574_vm5, %v1402_v20 }
 0x3dc   : > { %1212 = vmatpush3.bf16.msra.mxu1 %v787_v22 }
 0x3df   : > { %1214 = vmatmul.mubr.bf16.vlgmr.msra.gmra.mrb[16].mxu1 %v555_v27 }
 0x438   : > { %v873_v48 = vpop.permute.xlu1 (!%p1126_p9), %872  ;;  %v863_v49 = vpop.permute.xlu0 (!%p1126_p9), %862 }
 0x43c   : > { %v878_v53 = vpop.permute.xlu1 (!%p1126_p9), %877  ;;  %v868_v57 = vpop.permute.xlu0 (!%p1126_p9), %867 }
 0x4af   : > { %842 = sbr.rel (%p1126_p9) target bundleno = 1456 (0x5b0), region = 72 }
 0x4b2   : > { %v830_v30 = vpop.f32.mrb[16].mxu1 }
 0x4b3   : > { %v836_v31 = vadd.f32 %v830_v30, %v795_v29  ;;  %v1215_v32 = vpop.f32.mrb[17].mxu1 }
 0x4b4   : > { %v833_v33 = vpop.f32.mrb[18].mxu1 }
 0x4b5   : > { %837 = vst [vmem:[#allocation4] sm:$0xff] %v836_v31  ;;  %v1216_v34 = vpop.f32.mrb[19].mxu1 }
 0x4bc   : > { %v843_v36 = vld [vmem:[#allocation4 + $0x4] sm:$0x1] }
 0x4bd   : > { %1404 = vrcp.f32 %v843_v36  ;;  %v845_v42 = vld [vmem:[#allocation4] sm:$0xff] }
 0x4c7   : > { %v1405_v41 = vpop.eup %1404 }
 0x4c8   : > { %v849_v43 = vrot.slane %v1405_v41, %v2016_v23 }
 0x4ca   : > { %v850_v44 = vmul.f32 %v849_v43, %v845_v42 }
 0x4cc   : > { %v851_v45 = vpack.c.bf16 %v850_v44, %v850_v44 }
 0x4ce   : > { %1224 = vmatprep.subr.msk.bf16.mxu0 %vm599_vm4, %v851_v45  ;;  %v897_v46 = vsel %vm599_vm4, %v851_v45, 0 }
 0x4cf   : > { %1218 = vmatpush3.bf16.msra.mxu0 %v897_v46 }
 0x4d2   : > { %1220 = vmatmul.mubr.msk.bf16.vlgmr.msra.gmra.mrb[0].mxu0 %vm574_vm5, %v1403_v47 }
 0x5a5   : > { %v1221_v23 = vpop.f32.mrb[0].mxu0 }
 0x5a6   : > { %v942_v51 = vadd.f32 %v1221_v23, %v873_v48  ;;  %v933_v52 = vpop.f32.mrb[1].mxu0 }
 0x5a7   : > { %v934_v55 = vadd.f32 %v933_v52, %v863_v49  ;;  %v1222_v56 = vpop.f32.mrb[2].mxu0 }
 0x5a8   : > { %v952_v58 = vmul.f32 %v949_v50, %v942_v51  ;;  %v945_v60 = vadd.f32 %v1222_v56, %v878_v53  ;;  %v936_v61 = vpop.f32.mrb[3].mxu0 }
 0x5a9   : > { %v950_v62 = vmul.f32 %v949_v50, %v934_v55  ;;  %v937_v0 = vadd.f32 %v936_v61, %v868_v57 }
 0x5aa   : > { %v960_v1 = vadd.f32 %v956_v54, %v952_v58  ;;  %v953_v2 = vmul.f32 %v949_v50, %v945_v60 }
 0x5ab   : > { %v958_v4 = vadd.f32 %v954_v59, %v950_v62  ;;  %v951_v5 = vmul.f32 %v949_v50, %v937_v0 }
 0x5ac   : > { %964 = vst [vmem:[%s1953_s18 + $0x10] sm:$0xff] %v960_v1  ;;  %v961_v6 = vadd.f32 %v957_v63, %v953_v2 }
 0x5ad   : > { %962 = vst [vmem:[%s1953_s18] sm:$0xff] %v958_v4  ;;  %v959_v7 = vadd.f32 %v955_v3, %v951_v5 }
 0x5ae   : > { %965 = vst [vmem:[%s1953_s18 + $0x18] sm:$0xff] %v961_v6 }
 0x5af   : > { %963 = vst [vmem:[%s1953_s18 + $0x8] sm:$0xff] %v959_v7 }
 0x5b0 PF: > { %s2216_s29 = sld [smem:[#allocation17_spill]]  ;;  %s2217_s14 = sld [smem:[#allocation16_spill]] }
 0x5b1   : > { %s2218_s8 = sld [smem:[#allocation20_spill]]  ;;  %s981_s17 = sshll.u32 %s1953_s18, 4  ;;  %s2069_s17 = int_to_ptr.vmem [resolvable:$true] %s981_s17 }
 0x5b2   : > { %s2219_s28 = sld [smem:[#allocation27_spill]]  ;;  %s967_s20 = scalar_lea.sflag [#allocation8], %s1936_s9 }
 0x5b3   : > { %s1466_s7 = scalar_lea.vmem %s2069_s17, 512 }
 0x5b4   : > { %p1467_p11 = scmp.ne.s32.totalorder %s2069_s17, %s1466_s7 }
 0x5b6   : > { %s1132_s19 = sshll.u32 %s2216_s29, 3  ;;  %s1623_s29 = smov [#allocation11]  }
 0x5b7   : > { %s978_s24 = sadd.s32 %s2217_s14, %s1132_s19  ;;  %p2220_p3 = scmp.ne.s32.totalorder %s2218_s8, 0 }
 0x5b8   : > { %s1133_s6 = sshll.u32 %s978_s24, 7  ;;  %s1470_s14 = sshll.u32 %s1623_s29, 4  ;;  %s1471_s14 = int_to_ptr.vmem [resolvable:$false] %s1470_s14 }
 0x5b9   : > { %s2074_s0 = scalar_lea.hbm %s2219_s28, %s1133_s6  ;;  %p1468_p4 = pnand %p1467_p11, %p2220_p3 }
 0x5ba   : > { %s1472_s18 = scalar_lea.vmem %s1471_s14, 1024  ;;  %p1473_p10 = scmp.lt.s32.totalorder %s2069_s17, %s1471_s14 }
 0x5bb   : > { %p1469_p5 = pneg %p1468_p4  ;;  %p1474_p7 = scmp.lt.s32.totalorder %s1472_s18, %s1466_s7 }
 0x5bd   : > { %p1475_p13 = por %p1474_p7, %p1473_p10 }
 0x5bf   : > { %p1476_p2 = pnand %p1475_p13, %p1469_p5 }
 0x5c1   : > { %1479 = shalt.err (!%p1476_p2)
}
 0x5c2   : > { %s1480_s19 = scalar_lea.hbm %s2074_s0, 512  ;;  %s1484_s23 = scalar_lea.hbm %s2219_s28, 2048 }
 0x5c3   : > { %p1481_p12 = scmp.ne.s32.totalorder %s2074_s0, %s1480_s19  ;;  %p1485_p8 = scmp.lt.u32.totalorder %s2074_s0, %s2219_s28 }
 0x5c4   : > { %p1486_p1 = scmp.lt.u32.totalorder %s1484_s23, %s1480_s19  ;;  %p1488_p11 = scmp.lt.u32.totalorder %s1480_s19, %s2074_s0 }
 0x5c5   : > { %p1482_p0 = pnand %p1481_p12, %p2220_p3 }
 0x5c6   : > { %p1487_p9 = por %p1486_p1, %p1485_p8 }
 0x5c7   : > { %p1483_p6 = pneg %p1482_p0 }
 0x5c8   : > { %p1489_p4 = por %p1488_p11, %p1487_p9 }
 0x5ca   : > { %p1490_p5 = pnand %p1489_p4, %p1483_p6 }
 0x5cc   : > { %1493 = shalt.err (!%p1490_p5)
}
 0x5cd   : > { %s1624_s7 = smov 128   ;;  %s1625_s14 = smov 256  }
 0x5ce   : > { %s1626_s18 = smov 8  }
 0x5cf   : > { %1229 = dma.vmem_to_hbm [thread:$0]  (%p2220_p3), %s2069_s17, 512, %s2074_s0, %s967_s20, %s1624_s7, %s1625_s14, %s1626_s18  }
 0x5d0 PF: > { %s2221_s24 = sld [smem:[#allocation15_spill]]  ;;  %s2222_s6 = sld [smem:[#allocation21_spill]] }
 0x5d1   : > { %p1243_p10 = scmp.ge.s32.totalorder %s1608_s22, 2 }
 0x5d6   : > { %s996_s23 = sand.u32 1, %s2221_s24   ;;  %p2223_p7 = scmp.ne.s32.totalorder %s2222_s6, 0 }
 0x5d7   : > { %s997_s19 = scalar_lea.sflag [#allocation8], %s996_s23 }
 0x5d8   : > { %p1239_p13 = pnand %p1243_p10, %p2223_p7 }
 0x5da   : > { %1555 = dma.done.wait (!%p1239_p13), %s997_s19, 512  }
 0x5db   : > { %1557 = vsyncadd (!%p1239_p13), %s997_s19, 4294966784  ;;  %s29_s22 = sadd.s32 1, %s1608_s22   ;;  %s2225_s17 = sld [smem:[#allocation18_spill]] }
 0x5dc   : > { %p2105_p2 = scmp.ge.s32.totalorder %s29_s22, 10   ;;  %s2226_s8 = sld [smem:[#allocation19_spill]] }
 0x5dd   : > { %s2227_s19 = sld [smem:[#allocation22_spill]]  ;;  %s2228_s20 = sld [smem:[#allocation23_spill]] }
 0x5de   : > { %s2229_s9 = smov %s2247_s11  ;;  %s2230_s11 = smov %s1564_s12 }
 0x5df   : > { %s2231_s12 = smov %s1568_s13  ;;  %s2232_s13 = smov %s1900_s27 }
 0x5e0   : > { %s2233_s14 = smov %s1576_s15  ;;  %s2234_s15 = smov %s1580_s16 }
 0x5e1   : > { %s2235_s16 = smov %s1895_s10  ;;  %s2236_s18 = smov %s1604_s21 }
 0x5e2   : > { %s2237_s21 = smov %s2229_s9  ;;  %28 = sbr.rel (!%p2105_p2) target bundleno = 18 (0x12), region = 122 }
 0x5e9   :  { %1002 = vsyncpa [#allocation7], 1 }
 0x5ea   :  { %1004 = vsyncpa [#allocation7 + $0x1], 1 }
 0x5eb   :  { %1005 = vsyncpa [#allocation10], 1 }
 0x5ec   :  { %1007 = vsyncpa [#allocation10 + $0x1], 1 }
 0x5ed   :  { %1008 = vsyncpa [#allocation8], 1 }
 0x5ee   :  { %1010 = vsyncpa [#allocation8 + $0x1], 1 }

</bundles_post_ra>
